<compile_context>
chip_gen: v7x
topology: tpu7x:2x2x1
jax: 0.10.0
libtpu: 0.0.40
codegen_flags: <defaults>
</compile_context>

<pallas_src>
import functools

import jax
import jax.numpy as jnp
from jax.experimental import pallas as pl
from jax.experimental.pallas import tpu as pltpu


def _round_up(v, m):
    return -(-v // m) * m


def _write_partials(h_part, w_part, o_ref):
    """Write the two scalar partial sums into a lane-dense (1, 8, 128) tile."""
    sub = jax.lax.broadcasted_iota(jnp.int32, o_ref.shape, 1)
    tile = jnp.where(sub == 0, h_part, jnp.where(sub == 1, w_part, 0.0))
    o_ref[...] = tile.astype(o_ref.dtype)


def _tv_kernel_flat(x_ref, o_ref, *, n_valid, tbc, h, w, ragged):
    """Lane-dense path (W < 128): each slice is one H*W-lane row."""
    hw = h * w
    xb = x_ref[...].astype(jnp.float32)                      # (tbc, H*W)

    if ragged:
        # Zero slices past the end of the (partial) last block: a zero slice
        # contributes exactly zero to both diff sums.
        row = jax.lax.broadcasted_iota(jnp.int32, (tbc, 1), 0)
        valid = (row + pl.program_id(0) * tbc) < n_valid
        xb = jnp.where(valid, xb, 0.0)

    use_roll = (hw % 128 == 0) and hw > 1   # lane-roll needs an aligned minor dim

    # Vertical diffs: x[r, c] - x[r-1, c]  ==  flat[j] - flat[j-W], valid j >= W.
    if h > 1:
        if use_roll:
            dh = xb - pltpu.roll(xb, shift=w, axis=1)
            lane = jax.lax.broadcasted_iota(jnp.int32, (1, hw), 1)
            h_part = jnp.sum(jnp.where(lane >= w, dh * dh, 0.0))
        else:
            dh = xb[:, w:] - xb[:, :hw - w]
            h_part = jnp.sum(dh * dh)
    else:
        h_part = jnp.float32(0.0)

    # Horizontal diffs: x[r, c] - x[r, c-1]  ==  flat[j] - flat[j-1], j % W != 0.
    if w > 1:
        if use_roll:
            dw = xb - pltpu.roll(xb, shift=1, axis=1)
            lane = jax.lax.broadcasted_iota(jnp.int32, (1, hw), 1)
            w_part = jnp.sum(jnp.where(lane % w != 0, dw * dw, 0.0))
        else:
            dw = xb[:, 1:] - xb[:, :hw - 1]
            lane = jax.lax.broadcasted_iota(jnp.int32, (1, hw - 1), 1)
            w_part = jnp.sum(jnp.where((lane + 1) % w != 0, dw * dw, 0.0))
    else:
        w_part = jnp.float32(0.0)

    _write_partials(h_part, w_part, o_ref)


def _tv_kernel_3d(x_ref, o_ref, *, n_valid, tbc, h, w, ragged):
    """Native-layout path for lane-sized images (W >= 128): no wrapper relayout."""
    xb = x_ref[...].astype(jnp.float32)                      # (tbc, H, W)

    if ragged:
        row = jax.lax.broadcasted_iota(jnp.int32, (tbc, 1, 1), 0)
        valid = (row + pl.program_id(0) * tbc) < n_valid
        xb = jnp.where(valid, xb, 0.0)

    if h > 1:
        # TODO(synk): on v7x a sublane pltpu.roll(axis=1) + row mask would avoid
        # the offset-slice copies; kept as slices here for guaranteed lowering.
        dh = xb[:, 1:, :] - xb[:, :-1, :]
        h_part = jnp.sum(dh * dh)
    else:
        h_part = jnp.float32(0.0)

    if w > 1:
        if w % 128 == 0:
            dw = xb - pltpu.roll(xb, shift=1, axis=2)
            lane = jax.lax.broadcasted_iota(jnp.int32, (1, 1, w), 2)
            w_part = jnp.sum(jnp.where(lane >= 1, dw * dw, 0.0))
        else:
            dw = xb[:, :, 1:] - xb[:, :, :-1]
            w_part = jnp.sum(dw * dw)
    else:
        w_part = jnp.float32(0.0)

    _write_partials(h_part, w_part, o_ref)


def l_tv(x, tv_loss_weight=1.0, *, target_block_bytes=8 * 1024 * 1024,
         pallas_min_bytes=512 * 1024):
    """Total-variation loss; semantics identical to the PyTorch L_TV module.

    x: (B, C, H, W) array.  Returns a float32 scalar.
    """
    B, C, H, W = x.shape
    N = B * C
    count_h = (H - 1) * W      # NOTE: H == 1 or W == 1 gives Inf, same as PyTorch.
    count_w = H * (W - 1)

    def _finish(h_tv, w_tv):
        return tv_loss_weight * 2.0 * (h_tv / count_h + w_tv / count_w) / B

    # ---- Tiny-input fast path: kernel-launch overhead would dominate. ----
    total_bytes = x.size * x.dtype.itemsize
    if total_bytes < pallas_min_bytes:
        xf = x.astype(jnp.float32)
        h_tv = jnp.sum(jnp.square(xf[:, :, 1:, :] - xf[:, :, :H - 1, :]))
        w_tv = jnp.sum(jnp.square(xf[:, :, :, 1:] - xf[:, :, :, :W - 1]))
        return _finish(h_tv, w_tv)

    itemsize = x.dtype.itemsize
    use_flat = W < 128

    if use_flat:
        # Lane-dense: each (H, W) slice becomes one H*W-lane row, so small W
        # no longer wastes 128/W of every vreg / DMA.
        xr = x.reshape(N, H * W)
        padded_elems = _round_up(H * W, 128)
    else:
        # W already lane-sized: keep the native layout (no relayout copy).
        xr = x.reshape(N, H, W)
        padded_elems = _round_up(H, 8) * _round_up(W, 128)

    # ---- VMEM budget (padded layout + f32 temporaries, device-aware cap). ----
    try:
        phys_vmem = int(pltpu.get_tpu_info().vmem_capacity_bytes)
    except Exception:
        phys_vmem = 64 << 20                     # assume the smallest (v7x per-core)
    vmem_cap = min((phys_vmem * 3) // 4, 96 << 20)   # 48 MiB on v7x, 96 MiB otherwise

    slice_in_bytes = padded_elems * itemsize
    slice_f32_bytes = padded_elems * 4
    # 2x double-buffered input block + ~4x f32 block of in-kernel temporaries
    # (f32 upcast, rolled copy, diff, squared/masked) per slice.
    per_slice_budget = 2 * slice_in_bytes + 4 * slice_f32_bytes
    fixed_overhead = 2 << 20

    tbc_vmem = max(1, (vmem_cap - fixed_overhead) // per_slice_budget)
    tbc_target = max(1, int(target_block_bytes) // slice_in_bytes)
    tbc = max(1, min(N, tbc_target, tbc_vmem))
    if N >= 2:
        # Keep at least two blocks so both v7x TensorCores get work.
        tbc = min(tbc, -(-N // 2))
    if use_flat and tbc < N:
        # tbc is the second-minor (sublane) dim of the flat block: keep it
        # 8-aligned, or fall back to a single full block when N is tiny.
        tbc = (tbc // 8) * 8
        if tbc == 0:
            tbc = N if N <= 8 else 8

    num_blocks = -(-N // tbc)
    ragged = (N % tbc) != 0
    vmem_limit = int(min(max(per_slice_budget * tbc + fixed_overhead, 16 << 20),
                         vmem_cap))

    if use_flat:
        kernel = functools.partial(_tv_kernel_flat, n_valid=N, tbc=tbc,
                                   h=H, w=W, ragged=ragged)
        in_spec = pl.BlockSpec((tbc, H * W), lambda i: (i, 0))
    else:
        kernel = functools.partial(_tv_kernel_3d, n_valid=N, tbc=tbc,
                                   h=H, w=W, ragged=ragged)
        in_spec = pl.BlockSpec((tbc, H, W), lambda i: (i, 0, 0))

    parts = pl.pallas_call(
        kernel,
        out_shape=jax.ShapeDtypeStruct((num_blocks, 8, 128), jnp.float32),
        grid_spec=pltpu.PrefetchScalarGridSpec(
            num_scalar_prefetch=0,
            grid=(num_blocks,),
            in_specs=[in_spec],
            out_specs=pl.BlockSpec((1, 8, 128), lambda i: (i, 0, 0)),
        ),
        compiler_params=pltpu.CompilerParams(
            dimension_semantics=("parallel",),
            vmem_limit_bytes=vmem_limit,
        ),
    )(xr)

    # Tiny cross-block reduction in plain JAX (sublane 0 = h_tv, 1 = w_tv).
    h_tv = jnp.sum(parts[:, 0, 0])
    w_tv = jnp.sum(parts[:, 1, 0])
    return _finish(h_tv, w_tv)


def _l_tv_ref(x, tv_loss_weight=1.0):
    """Pure-JAX reference (mirrors the PyTorch forward exactly)."""
    B, _, H, W = x.shape
    count_h = (H - 1) * W
    count_w = H * (W - 1)
    h_tv = jnp.sum(jnp.square(x[:, :, 1:, :] - x[:, :, :H - 1, :]))
    w_tv = jnp.sum(jnp.square(x[:, :, :, 1:] - x[:, :, :, :W - 1]))
    return tv_loss_weight * 2.0 * (h_tv / count_h + w_tv / count_w) / B


if __name__ == "__main__":
    key = jax.random.PRNGKey(0)
    k0, k1, k2, k3 = jax.random.split(key, 4)

    # 1) Primary module-sized input (8 KiB): exercises the fused-XLA fast path.
    x = jax.random.normal(k0, (2, 4, 16, 16), dtype=jnp.float32)
    ref = _l_tv_ref(x, 1.0)
    out = jax.block_until_ready(l_tv(x, tv_loss_weight=1.0))
    assert jnp.allclose(out, ref, rtol=1e-4, atol=1e-4), (out, ref)

    # 2) Same input, forcing the lane-dense flat Pallas kernel (rolls + masks).
    out = jax.block_until_ready(l_tv(x, tv_loss_weight=1.0, pallas_min_bytes=0))
    assert jnp.allclose(out, ref, rtol=1e-4, atol=1e-4), (out, ref)

    # 3) Ragged N, multi-block flat path (row mask on the partial last block).
    x2 = jax.random.normal(k1, (4, 5, 16, 16), dtype=jnp.float32)
    ref2 = _l_tv_ref(x2, 0.5)
    out2 = jax.block_until_ready(l_tv(x2, tv_loss_weight=0.5, pallas_min_bytes=0,
                                      target_block_bytes=8192))
    assert jnp.allclose(out2, ref2, rtol=1e-4, atol=1e-4), (out2, ref2)

    # 4) Lane-aligned W (>= 128): native 3-D block path, roll-based w-diff.
    x3 = jax.random.normal(k2, (1, 2, 8, 128), dtype=jnp.float32)
    ref3 = _l_tv_ref(x3, 1.0)
    out3 = jax.block_until_ready(l_tv(x3, tv_loss_weight=1.0, pallas_min_bytes=0))
    assert jnp.allclose(out3, ref3, rtol=1e-4, atol=1e-4), (out3, ref3)

    # 5) Lane-aligned W with ragged N (exercises the 3-D row mask).
    x4 = jax.random.normal(k3, (1, 3, 8, 128), dtype=jnp.float32)
    ref4 = _l_tv_ref(x4, 1.0)
    out4 = jax.block_until_ready(l_tv(x4, tv_loss_weight=1.0, pallas_min_bytes=0,
                                      target_block_bytes=8192))
    assert jnp.allclose(out4, ref4, rtol=1e-4, atol=1e-4), (out4, ref4)

    print("KERNEL_OK")
</pallas_src>

<mosaic_0001>
module attributes {stable_mosaic.version = 11 : i64} {
  func.func @_tv_kernel_flat(%arg0: i32, %arg1: memref<8x256xf32, #tpu.memory_space<vmem>>, %arg2: memref<1x8x128xf32, #tpu.memory_space<vmem>>) attributes {dimension_semantics = [#tpu.dimension_semantics<parallel>], iteration_bounds = array<i64: 1>, scalar_prefetch = 0 : i64, scratch_operands = 0 : i64, tpu.core_type = #tpu.core_type<tc>, window_params = [{transform_indices = @transform_0, window_bounds = array<i64: 8, 256>}, {transform_indices = @transform_1, window_bounds = array<i64: 1, 8, 128>}]} {
    %c0 = arith.constant 0 : index
    %c0_0 = arith.constant 0 : index
    %0 = vector.load %arg1[%c0, %c0_0] : memref<8x256xf32, #tpu.memory_space<vmem>>, vector<8x256xf32>
    %c16_i32 = arith.constant 16 : i32
    %1 = tpu.dynamic_rotate %0 by %c16_i32 dim 1 : vector<8x256xf32>, i32 -> vector<8x256xf32>
    %2 = arith.subf %0, %1 : vector<8x256xf32>
    %3 = tpu.iota {dimensions = array<i32: 1>} : vector<1x256xi32>
    %c16_i32_1 = arith.constant 16 : i32
    %4 = vector.broadcast %c16_i32_1 : i32 to vector<1x256xi32>
    %5 = arith.cmpi sge, %3, %4 : vector<1x256xi32>
    %6 = arith.mulf %2, %2 : vector<8x256xf32>
    %cst = arith.constant 0.000000e+00 : f32
    %7 = vector.shape_cast %5 : vector<1x256xi1> to vector<1x256xi1>
    %8 = vector.broadcast %7 : vector<1x256xi1> to vector<8x256xi1>
    %9 = vector.broadcast %cst : f32 to vector<8x256xf32>
    %10 = arith.select %8, %6, %9 : vector<8x256xi1>, vector<8x256xf32>
    %11 = vector.shape_cast %10 : vector<8x256xf32> to vector<1x8x256xf32>
    %cst_2 = arith.constant dense<0.000000e+00> : vector<1xf32>
    %12 = vector.multi_reduction <add>, %11, %cst_2 [1, 2] : vector<1x8x256xf32> to vector<1xf32>
    %13 = vector.shape_cast %12 : vector<1xf32> to vector<1x1x1xf32>
    %14 = vector.extract %13[0, 0, 0] : f32 from vector<1x1x1xf32>
    %c1_i32 = arith.constant 1 : i32
    %15 = tpu.dynamic_rotate %0 by %c1_i32 dim 1 : vector<8x256xf32>, i32 -> vector<8x256xf32>
    %16 = arith.subf %0, %15 : vector<8x256xf32>
    %17 = tpu.iota {dimensions = array<i32: 1>} : vector<1x256xi32>
    %c16_i32_3 = arith.constant 16 : i32
    %c0_i32 = arith.constant 0 : i32
    %18 = arith.cmpi eq, %c16_i32_3, %c0_i32 : i32
    %c1_i32_4 = arith.constant 1 : i32
    %19 = arith.select %18, %c1_i32_4, %c16_i32_3 : i32
    %20 = vector.broadcast %19 : i32 to vector<1x256xi32>
    %21 = arith.remsi %17, %20 : vector<1x256xi32>
    %c0_i32_5 = arith.constant 0 : i32
    %22 = vector.broadcast %c0_i32_5 : i32 to vector<1x256xi32>
    %23 = arith.cmpi ne, %21, %22 : vector<1x256xi32>
    %c0_i32_6 = arith.constant 0 : i32
    %24 = vector.broadcast %c0_i32_6 : i32 to vector<1x256xi32>
    %25 = arith.cmpi slt, %21, %24 : vector<1x256xi32>
    %c0_i32_7 = arith.constant 0 : i32
    %26 = arith.cmpi slt, %19, %c0_i32_7 : i32
    %27 = vector.broadcast %26 : i1 to vector<1x256xi1>
    %28 = vector.broadcast %27 : vector<1x256xi1> to vector<1x256xi1>
    %29 = arith.xori %25, %28 : vector<1x256xi1>
    %30 = arith.andi %29, %23 : vector<1x256xi1>
    %31 = vector.broadcast %19 : i32 to vector<1x256xi32>
    %32 = arith.addi %21, %31 : vector<1x256xi32>
    %33 = arith.select %30, %32, %21 : vector<1x256xi1>, vector<1x256xi32>
    %c0_i32_8 = arith.constant 0 : i32
    %34 = vector.broadcast %c0_i32_8 : i32 to vector<1x256xi32>
    %35 = arith.cmpi ne, %33, %34 : vector<1x256xi32>
    %36 = arith.mulf %16, %16 : vector<8x256xf32>
    %cst_9 = arith.constant 0.000000e+00 : f32
    %37 = vector.shape_cast %35 : vector<1x256xi1> to vector<1x256xi1>
    %38 = vector.broadcast %37 : vector<1x256xi1> to vector<8x256xi1>
    %39 = vector.broadcast %cst_9 : f32 to vector<8x256xf32>
    %40 = arith.select %38, %36, %39 : vector<8x256xi1>, vector<8x256xf32>
    %41 = vector.shape_cast %40 : vector<8x256xf32> to vector<1x8x256xf32>
    %cst_10 = arith.constant dense<0.000000e+00> : vector<1xf32>
    %42 = vector.multi_reduction <add>, %41, %cst_10 [1, 2] : vector<1x8x256xf32> to vector<1xf32>
    %43 = vector.shape_cast %42 : vector<1xf32> to vector<1x1x1xf32>
    %44 = vector.extract %43[0, 0, 0] : f32 from vector<1x1x1xf32>
    %45 = tpu.iota {dimensions = array<i32: 1>} : vector<1x8x128xi32>
    %c0_i32_11 = arith.constant 0 : i32
    %46 = vector.broadcast %c0_i32_11 : i32 to vector<1x8x128xi32>
    %47 = arith.cmpi eq, %45, %46 : vector<1x8x128xi32>
    %c1_i32_12 = arith.constant 1 : i32
    %48 = vector.broadcast %c1_i32_12 : i32 to vector<1x8x128xi32>
    %49 = arith.cmpi eq, %45, %48 : vector<1x8x128xi32>
    %cst_13 = arith.constant 0.000000e+00 : f32
    %50 = vector.broadcast %44 : f32 to vector<1x8x128xf32>
    %51 = vector.broadcast %cst_13 : f32 to vector<1x8x128xf32>
    %52 = arith.select %49, %50, %51 : vector<1x8x128xi1>, vector<1x8x128xf32>
    %53 = vector.broadcast %14 : f32 to vector<1x8x128xf32>
    %54 = arith.select %47, %53, %52 : vector<1x8x128xi1>, vector<1x8x128xf32>
    %c0_14 = arith.constant 0 : index
    %c0_15 = arith.constant 0 : index
    %c0_16 = arith.constant 0 : index
    %55 = vector.load %arg2[%c0_14, %c0_15, %c0_16] : memref<1x8x128xf32, #tpu.memory_space<vmem>>, vector<1x8x128xf32>
    tpu.vector_store %arg2[%c0_14, %c0_15, %c0_16], %54 {strides = array<i32>} : memref<1x8x128xf32, #tpu.memory_space<vmem>>, vector<1x8x128xf32>,
    return
  }
  func.func @transform_0(%arg0: i32) -> (i32, i32) {
    %c0_i32 = arith.constant 0 : i32
    %c0_i32_0 = arith.constant 0 : i32
    return %arg0, %c0_i32 : i32, i32
  }
  func.func @transform_1(%arg0: i32) -> (i32, i32, i32) {
    %c0_i32 = arith.constant 0 : i32
    %c0_i32_0 = arith.constant 0 : i32
    %c0_i32_1 = arith.constant 0 : i32
    return %arg0, %c0_i32, %c0_i32_0 : i32, i32, i32
  }
}

</mosaic_0001>

<bundles_post_ra>
// kernel: tpu_custom_call.1
= control target key start
LH: loop header
LB: loop body
LE: loop exit
PB: predicated region body
PF: predicated region fallthrough
CT: control target
= control target key end

     0   :  { %6 = vsyncpa [#allocation3], 0  ;;  %s226_s0 = inlined_call_operand.hbm [shape: f32[8,256], index: 0, kind: input, shape index: {}]   ;;  %s227_s1 = inlined_call_operand.hbm [shape: f32[1,8,128], index: 1, kind: output, shape index: {}]  }
   0x1   :  { %7 = vsyncpa [#allocation4], 0  ;;  %s188_s6 = smov [#allocation2]   ;;  %s140_s10 = scalar_lea.hbm %s226_s0, 256 }
   0x2   :  { %s14_s7 = sshll.u32 %s188_s6, 4  ;;  %p141_p0 = scmp.ne.s32.totalorder %s226_s0, %s140_s10  ;;  %s15_s7 = int_to_ptr.vmem [resolvable:$true] %s14_s7 }
   0x3   :  { %p144_p1 = scmp.lt.u32.totalorder %s140_s10, %s226_s0 }
   0x5   :  { %p146_p2 = pnand %p144_p1, %p141_p0 }
   0x7   :  { %149 = shalt.err (!%p146_p2)
}
   0x8   :  { %s150_s15 = scalar_lea.vmem %s15_s7, 256  ;;  %p155_p4 = scmp.lt.s32.totalorder %s15_s7, %s15_s7 }
   0x9   :  { %p151_p3 = scmp.ne.s32.totalorder %s15_s7, %s150_s15  ;;  %p156_p5 = scmp.lt.s32.totalorder %s150_s15, %s150_s15 }
   0xb   :  { %p157_p6 = por %p156_p5, %p155_p4 }
   0xd   :  { %p158_p7 = pnand %p157_p6, %p151_p3 }
   0xf   :  { %161 = shalt.err (!%p158_p7)
}
  0x10   :  { %17 = dma.hbm_to_vmem [thread:$0]  %s226_s0, 256, %s15_s7, [#allocation3]  }
  0x11   :  { %184 = dma.done.wait [#allocation3], 256  }
  0x12   :  { %185 = vsyncadd [#allocation3], 4294967040  ;;  %v21_v0 = vld [vmem:[#allocation2] sm:$0xff]  ;;  %s189_s18 = smov 1   ;;  %s190_s19 = smov 16   ;;  %v22_v1 = vld [vmem:[#allocation2 + $0x8] sm:$0xff]  ;;  %v27_v2 = vlaneseq }
  0x13   :  { %55 = vrot.lane.b32.xlu1 %v21_v0, %s189_s18  ;;  %23 = vrot.lane.b32.xlu0 %v21_v0, %s190_s19  ;;  %s191_s20 = smov [#allocation5]  }
  0x14   :  { %v28_v3 = vand.u32 127, %v27_v2  ;;  %v109_v42 = vshrl.u32 %v27_v2, 7  ;;  %s123_s21 = sshll.u32 %s191_s20, 4  ;;  %s124_s21 = int_to_ptr.vmem [resolvable:$true] %s123_s21 }
  0x15   :  { %s162_s23 = scalar_lea.vmem %s124_s21, 128  ;;  %p167_p9 = scmp.lt.s32.totalorder %s124_s21, %s124_s21 }
  0x16   :  { %v34_v4 = vadd.s32 128, %v28_v3  ;;  %vm59_vm0 = vcmp.lt.s32.totalorder %v28_v3, 1  ;;  %vm29_vm1 = vcmp.lt.s32.totalorder %v28_v3, 16  ;;  %v68_v7 = vand.u32 15, %v28_v3  ;;  %p163_p8 = scmp.ne.s32.totalorder %s124_s21, %s162_s23  ;;  %p168_p10 = scmp.lt.s32.totalorder %s162_s23, %s162_s23 }
  0x17   :  { %57 = vrot.lane.b32.xlu1 %v22_v1, %s189_s18  ;;  %25 = vrot.lane.b32.xlu0 %v22_v1, %s190_s19  ;;  %vm35_vm4 = vcmp.ge.s32.totalorder %v28_v3, 16  ;;  %vm111_vm5 = vcmp.eq.s32.totalorder %v109_v42, 1  ;;  %vm110_vm6 = vcmp.eq.s32.totalorder %v109_v42, 0 }
  0x18   :  { %v75_v8 = vand.u32 15, %v34_v4  ;;  %vm88_vm2 = vcmp.ne.s32.totalorder %v68_v7, 0  ;;  %p169_p11 = por %p168_p10, %p167_p9 }
  0x1a   :  { %vm89_vm3 = vcmp.ne.s32.totalorder %v75_v8, 0  ;;  %p170_p12 = pnand %p169_p11, %p163_p8 }
  0x85   :  { %v56_v5 = vpop.permute.xlu1 %55  ;;  %v24_v6 = vpop.permute.xlu0 %23 }
  0x89   :  { %v58_v9 = vpop.permute.xlu1 %57  ;;  %v26_v10 = vpop.permute.xlu0 %25 }
  0x8a   :  { %v60_v11 = vsel %vm59_vm0, %v56_v5, %v58_v9  ;;  %v61_v12 = vsel %vm59_vm0, %v58_v9, %v56_v5  ;;  %v30_v13 = vsel %vm29_vm1, %v24_v6, %v26_v10  ;;  %v31_v14 = vsel %vm29_vm1, %v26_v10, %v24_v6 }
  0x8b   :  { %v62_v15 = vsub.f32 %v21_v0, %v61_v12  ;;  %v63_v16 = vsub.f32 %v22_v1, %v60_v11  ;;  %v32_v17 = vsub.f32 %v21_v0, %v31_v14  ;;  %v33_v18 = vsub.f32 %v22_v1, %v30_v13 }
  0x8d   :  { %v90_v19 = vmul.f32 %v62_v15, %v62_v15  ;;  %v91_v20 = vmul.f32 %v63_v16, %v63_v16  ;;  %v37_v21 = vmul.f32 %v32_v17, %v32_v17  ;;  %v38_v22 = vmul.f32 %v33_v18, %v33_v18 }
  0x8f   :  { %v96_v23 = vsel %vm88_vm2, %v90_v19, 0.0  ;;  %v97_v24 = vsel %vm89_vm3, %v91_v20, 0.0  ;;  %v43_v25 = vsel %vm35_vm4, %v37_v21, 0.0 }
  0x90   :  { %v98_v26 = vadd.f32 %v97_v24, %v96_v23  ;;  %v45_v27 = vadd.f32 %v43_v25, %v38_v22 }
  0x92   :  { %99 = vadd.xlane.f32.xlu1 %v98_v26  ;;  %46 = vadd.xlane.f32.xlu0 %v45_v27 }
 0x11f   :  { %v100_v28 = vpop.xlane.xlu1 %99  ;;  %v47_v29 = vpop.xlane.xlu0 %46 }
 0x120   :  { %v101_v30 = vrot.slane %v100_v28, 4  ;;  %v48_v31 = vrot.slane %v47_v29, 4 }
 0x122   :  { %v102_v32 = vadd.f32 %v101_v30, %v100_v28  ;;  %v49_v33 = vadd.f32 %v48_v31, %v47_v29 }
 0x124   :  { %v103_v34 = vrot.slane %v102_v32, 2  ;;  %v50_v35 = vrot.slane %v49_v33, 2 }
 0x126   :  { %v104_v36 = vadd.f32 %v103_v34, %v102_v32  ;;  %v51_v37 = vadd.f32 %v50_v35, %v49_v33 }
 0x128   :  { %v52_v38 = vrot.slane %v51_v37, 1  ;;  %v105_v39 = vrot.slane %v104_v36, 1 }
 0x12a   :  { %v53_v40 = vadd.f32 %v52_v38, %v51_v37  ;;  %v106_v41 = vadd.f32 %v105_v39, %v104_v36 }
 0x12c   :  { %132 = vpush %v53_v40 }
 0x12d   :  { %134 = vpush %v106_v41 }
 0x15d   :  { %s133_s0 = spop %132 }
 0x15e   :  { %v114_v43 = vstv %s133_s0  ;;  %s135_s22 = spop %134 }
 0x15f   :  { %v112_v44 = vstv %s135_s22 }
 0x160   :  { %v113_v45 = vsel %vm111_vm5, %v112_v44, 0.0 }
 0x161   :  { %v115_v46 = vsel %vm110_vm6, %v114_v43, %v113_v45 }
 0x162   :  { %116 = vst [vmem:[#allocation5] sm:$0xff] %v115_v46 }
 0x163   :  { %173 = shalt.err (!%p170_p12)
}
 0x164   :  { %s174_s26 = scalar_lea.hbm %s227_s1, 128 }
 0x165   :  { %p175_p13 = scmp.ne.s32.totalorder %s227_s1, %s174_s26  ;;  %p178_p0 = scmp.lt.u32.totalorder %s174_s26, %s227_s1 }
 0x167   :  { %p180_p1 = pnand %p178_p0, %p175_p13 }
 0x169   :  { %183 = shalt.err (!%p180_p1)
}
 0x16a   :  { %126 = dma.vmem_to_hbm [thread:$0]  %s124_s21, 128, %s227_s1, [#allocation4]  }
 0x16b   :  { %186 = dma.done.wait [#allocation4], 128  }
 0x16c   :  { %187 = vsyncadd [#allocation4], 4294967168 }
 0x16d   :  { %130 = vsyncpa [#allocation3], 1 }
 0x16e   :  { %131 = vsyncpa [#allocation4], 1 }

</bundles_post_ra>
